<compile_context>
chip_gen: v6e
topology: v6e:2x2x1
jax: 0.10.0
libtpu: 0.0.40
codegen_flags: <defaults>
</compile_context>

<pallas_src>
import jax
import jax.numpy as jnp
from jax.experimental import pallas as pl
from jax.experimental.pallas import tpu as pltpu

_FEATURES = 64               # PredictorFF input width
_LANE = 128                  # TPU lane width
_PACK = _LANE // _FEATURES   # 2 original rows per packed 128-lane row
_TILE_P = 4096               # packed rows per grid step (= 8192 original rows)
_SMALL_B = 4096              # below this, plain XLA matvec is faster end-to-end


def _packed_ff_kernel(x_ref, w_ref, b_ref, o_ref):
    """Per packed row r (two original rows side by side in the 128 lanes):
         o[r, 0] = sum(x[r, :64]  * w_eff) + b_eff
         o[r, 1] = sum(x[r, 64:]  * w_eff) + b_eff
    w_ref[0] = [w_eff ; 0*64], w_ref[1] = [0*64 ; w_eff], so each half-sum is a
    plain full-lane reduce (VPU mul + XLU reduce), no masks / relayouts."""
    xt = x_ref[...]                                              # (tile_p, 128)
    s0 = jnp.sum(xt * w_ref[0:1, :], axis=-1, keepdims=True)     # (tile_p, 1)
    s1 = jnp.sum(xt * w_ref[1:2, :], axis=-1, keepdims=True)     # (tile_p, 1)
    o_ref[...] = jnp.concatenate([s0, s1], axis=-1) + b_ref[0]   # (tile_p, 2)


def _fold_affine(w1, b1, w2, b2, w3, b3):
    """Fold the three Linears (PyTorch (out,in) layout) into one affine map."""
    hi = jax.lax.Precision.HIGHEST
    w_eff = jnp.dot(jnp.dot(w1.T, w2.T, precision=hi), w3.T, precision=hi)  # (64, 1)
    b_eff = jnp.dot(jnp.dot(b1, w2.T, precision=hi) + b2, w3.T,
                    precision=hi) + b3                                       # (1,)
    return w_eff.astype(jnp.float32), b_eff.astype(jnp.float32)


def predictor_ff(x, w1, b1, w2, b2, w3, b3, *, force_pallas=False):
    """Forward pass of PredictorFF. x: (B, 64) f32 -> (B, 1) f32."""
    x = x.astype(jnp.float32)
    B, F = x.shape
    assert F == _FEATURES, f"PredictorFF expects 64 input features, got {F}"

    w_eff, b_eff = _fold_affine(w1, b1, w2, b2, w3, b3)

    # ---- Small-batch fast path: one fused XLA matvec, no kernel launch. -----
    if B <= _SMALL_B and not force_pallas:
        return jnp.dot(x, w_eff, precision=jax.lax.Precision.HIGHEST) + b_eff

    # ---- Lane-pack two 64-feature rows per 128-lane row. --------------------
    # Even B: contiguous reshape, no copy.  Odd B (rare): one-row concat copy.
    if B % _PACK != 0:
        pad_rows = _PACK - B % _PACK
        x = jnp.concatenate([x, jnp.zeros((pad_rows, F), x.dtype)], axis=0)
    P = x.shape[0] // _PACK
    x_packed = x.reshape(P, _LANE)

    # Two pre-masked copies of the folded weight row -> full-lane reduces.
    w_vec = w_eff.reshape(F)
    zeros = jnp.zeros((F,), jnp.float32)
    w_rows = jnp.stack([jnp.concatenate([w_vec, zeros]),
                        jnp.concatenate([zeros, w_vec])])        # (2, 128)
    b_smem = b_eff.reshape(1)                                    # SMEM scalar

    # ---- Tiling: big lane-dense blocks; partial trailing block, no padding. -
    tile_p = P if P <= _TILE_P else _TILE_P
    num_tiles = pl.cdiv(P, tile_p)

    cost = pl.CostEstimate(
        flops=4 * P * _LANE,
        transcendentals=0,
        bytes_accessed=P * _LANE * 4 + P * _PACK * 4 + _PACK * _LANE * 4 + 4,
    )

    out_packed = pl.pallas_call(
        _packed_ff_kernel,
        out_shape=jax.ShapeDtypeStruct((P, _PACK), jnp.float32),
        grid=(num_tiles,),
        in_specs=[
            # x: one (tile_p, 128) lane-dense block per step, auto double-buffered.
            pl.BlockSpec((tile_p, _LANE), lambda i: (i, 0)),
            # Folded weights: constant index_map -> VMEM-resident, no re-DMA.
            pl.BlockSpec((_PACK, _LANE), lambda i: (0, 0)),
            # Folded bias: scalar in SMEM, whole-array (no blocking).
            pl.BlockSpec(memory_space=pltpu.MemorySpace.SMEM),
        ],
        out_specs=pl.BlockSpec((tile_p, _PACK), lambda i: (i, 0)),
        compiler_params=pltpu.CompilerParams(
            dimension_semantics=("parallel",),   # shard tiles over v7x's 2 TCs
        ),
        cost_estimate=cost,
    )(x_packed, w_rows, b_smem)

    return out_packed.reshape(-1)[:B].reshape(B, 1)


def _init_linear(key, out_features, in_features):
    """Deterministic init mimicking nn.Linear default (uniform +/- 1/sqrt(fan_in))."""
    kw, kb = jax.random.split(key)
    bound = 1.0 / jnp.sqrt(jnp.float32(in_features))
    w = jax.random.uniform(kw, (out_features, in_features), jnp.float32,
                           -bound, bound)
    b = jax.random.uniform(kb, (out_features,), jnp.float32, -bound, bound)
    return w, b


def _reference(x, w1, b1, w2, b2, w3, b3):
    hi = jax.lax.Precision.HIGHEST
    h = jnp.dot(x, w1.T, precision=hi) + b1
    h = jnp.dot(h, w2.T, precision=hi) + b2
    return jnp.dot(h, w3.T, precision=hi) + b3


if __name__ == "__main__":
    key = jax.random.PRNGKey(0)
    kx, k1, k2, k3 = jax.random.split(key, 4)

    w1, b1 = _init_linear(k1, 64, 64)
    w2, b2 = _init_linear(k2, 64, 64)
    w3, b3 = _init_linear(k3, 1, 64)

    # Small batch, forced through the Pallas kernel (single tiny tile).
    B = 8
    x = jax.random.normal(kx, (B, 64), jnp.float32)
    out = jax.block_until_ready(
        predictor_ff(x, w1, b1, w2, b2, w3, b3, force_pallas=True))
    ref = _reference(x, w1, b1, w2, b2, w3, b3)
    assert out.shape == (B, 1)
    assert jnp.allclose(out, ref, atol=1e-4, rtol=1e-4)

    # Default small-batch dispatch (XLA fast path) must agree too.
    out_fast = jax.block_until_ready(predictor_ff(x, w1, b1, w2, b2, w3, b3))
    assert jnp.allclose(out_fast, ref, atol=1e-4, rtol=1e-4)

    # Odd batch through the kernel (exercises the parity handling).
    B1 = 7
    x1 = jax.random.normal(kx, (B1, 64), jnp.float32)
    out1 = jax.block_until_ready(
        predictor_ff(x1, w1, b1, w2, b2, w3, b3, force_pallas=True))
    ref1 = _reference(x1, w1, b1, w2, b2, w3, b3)
    assert out1.shape == (B1, 1)
    assert jnp.allclose(out1, ref1, atol=1e-4, rtol=1e-4)

    # Large batch: multi-tile grid with a partial trailing block.
    B2 = 3 * _PACK * _TILE_P + 7
    x2 = jax.random.normal(kx, (B2, 64), jnp.float32)
    out2 = jax.block_until_ready(predictor_ff(x2, w1, b1, w2, b2, w3, b3))
    ref2 = _reference(x2, w1, b1, w2, b2, w3, b3)
    assert out2.shape == (B2, 1)
    assert jnp.allclose(out2, ref2, atol=1e-4, rtol=1e-4)

    print("KERNEL_OK")
</pallas_src>

<mosaic_0001>
module attributes {stable_mosaic.version = 11 : i64} {
  func.func @_packed_ff_kernel(%arg0: i32, %arg1: memref<4x128xf32, #tpu.memory_space<vmem>>, %arg2: memref<2x128xf32, #tpu.memory_space<vmem>>, %arg3: memref<1xf32, #tpu.memory_space<smem>>, %arg4: memref<4x2xf32, #tpu.memory_space<vmem>>) attributes {dimension_semantics = [#tpu.dimension_semantics<parallel>], iteration_bounds = array<i64: 1>, scalar_prefetch = 0 : i64, scratch_operands = 0 : i64, tpu.core_type = #tpu.core_type<tc>, window_params = [{transform_indices = @transform_0, window_bounds = array<i64: 4, 128>}, {pipeline_mode = #tpu.pipeline_mode<synchronous>, transform_indices = @transform_1, window_bounds = array<i64: 2, 128>}, {transform_indices = @transform_2, window_bounds = array<i64: 1>}, {transform_indices = @transform_3, window_bounds = array<i64: 4, 2>}]} {
    %c0 = arith.constant 0 : index
    %c0_0 = arith.constant 0 : index
    %0 = vector.load %arg1[%c0, %c0_0] : memref<4x128xf32, #tpu.memory_space<vmem>>, vector<4x128xf32>
    %c0_1 = arith.constant 0 : index
    %c0_2 = arith.constant 0 : index
    %1 = vector.load %arg2[%c0_1, %c0_2] : memref<2x128xf32, #tpu.memory_space<vmem>>, vector<1x128xf32>
    %2 = vector.broadcast %1 : vector<1x128xf32> to vector<4x128xf32>
    %3 = arith.mulf %0, %2 : vector<4x128xf32>
    %cst = arith.constant dense<0.000000e+00> : vector<4xf32>
    %4 = vector.multi_reduction <add>, %3, %cst [1] : vector<4x128xf32> to vector<4xf32>
    %5 = vector.shape_cast %4 : vector<4xf32> to vector<4x1xf32>
    %c1 = arith.constant 1 : index
    %c0_3 = arith.constant 0 : index
    %6 = vector.load %arg2[%c1, %c0_3] : memref<2x128xf32, #tpu.memory_space<vmem>>, vector<1x128xf32>
    %7 = vector.broadcast %6 : vector<1x128xf32> to vector<4x128xf32>
    %8 = arith.mulf %0, %7 : vector<4x128xf32>
    %cst_4 = arith.constant dense<0.000000e+00> : vector<4xf32>
    %9 = vector.multi_reduction <add>, %8, %cst_4 [1] : vector<4x128xf32> to vector<4xf32>
    %10 = vector.shape_cast %9 : vector<4xf32> to vector<4x1xf32>
    %11 = tpu.concatenate %5, %10 in 1 : vector<4x1xf32>, vector<4x1xf32> -> vector<4x2xf32>
    %c0_5 = arith.constant 0 : index
    %12 = memref.load %arg3[%c0_5] : memref<1xf32, #tpu.memory_space<smem>>
    %13 = vector.broadcast %12 : f32 to vector<4x2xf32>
    %14 = arith.addf %11, %13 : vector<4x2xf32>
    %c0_6 = arith.constant 0 : index
    %c0_7 = arith.constant 0 : index
    %15 = vector.load %arg4[%c0_6, %c0_7] : memref<4x2xf32, #tpu.memory_space<vmem>>, vector<4x2xf32>
    tpu.vector_store %arg4[%c0_6, %c0_7], %14 {strides = array<i32>} : memref<4x2xf32, #tpu.memory_space<vmem>>, vector<4x2xf32>,
    return
  }
  func.func @transform_0(%arg0: i32) -> (i32, i32) {
    %c0_i32 = arith.constant 0 : i32
    %c0_i32_0 = arith.constant 0 : i32
    return %arg0, %c0_i32 : i32, i32
  }
  func.func @transform_1(%arg0: i32) -> (i32, i32) {
    %c0_i32 = arith.constant 0 : i32
    %c0_i32_0 = arith.constant 0 : i32
    %c0_i32_1 = arith.constant 0 : i32
    return %c0_i32, %c0_i32_0 : i32, i32
  }
  func.func @transform_2(%arg0: i32) -> i32 {
    %c0_i32 = arith.constant 0 : i32
    %c0_i32_0 = arith.constant 0 : i32
    return %c0_i32 : i32
  }
  func.func @transform_3(%arg0: i32) -> (i32, i32) {
    %c0_i32 = arith.constant 0 : i32
    %c0_i32_0 = arith.constant 0 : i32
    return %arg0, %c0_i32 : i32, i32
  }
}

</mosaic_0001>

<bundles_post_ra>
// kernel: tpu_custom_call.1
= control target key start
LH: loop header
LB: loop body
LE: loop exit
PB: predicated region body
PF: predicated region fallthrough
CT: control target
= control target key end

     0   :  { %9 = vsyncpa [#allocation4], 0  ;;  %s84_s12 = smov [#allocation3]   ;;  %s120_s0 = inlined_call_operand.hbm [shape: f32[4,128], index: 0, kind: input, shape index: {}]   ;;  %s121_s1 = inlined_call_operand.vmem [shape: f32[2,128], index: 1, kind: input, shape index: {}]   ;;  %s122_s2 = inlined_call_operand.<no memory space> [shape: f32[1], index: 2, kind: input, shape index: {}]   ;;  %s123_s3 = inlined_call_operand.vmem [shape: f32[4,2], index: 3, kind: output, shape index: {}]  }
   0x1   :  { %s16_s13 = sshll.u32 %s84_s12, 4  ;;  %s17_s13 = int_to_ptr.vmem [resolvable:$true] %s16_s13 }
   0x2   :  { %s70_s14 = scalar_lea.vmem %s17_s13, 64  ;;  %p75_p1 = scmp.lt.s32.totalorder %s17_s13, %s17_s13 }
   0x3   :  { %p71_p0 = scmp.ne.s32.totalorder %s17_s13, %s70_s14  ;;  %p76_p2 = scmp.lt.s32.totalorder %s70_s14, %s70_s14 }
   0x5   :  { %p77_p3 = por %p76_p2, %p75_p1 }
   0x7   :  { %p78_p4 = pnand %p77_p3, %p71_p0 }
   0x9   :  { %81 = shalt.err (!%p78_p4)
}
   0xa   :  { %19 = dma.hbm_to_vmem [thread:$0]  %s120_s0, 64, %s17_s13, [#allocation4]  }
   0xb   :  { %82 = dma.done.wait [#allocation4], 64  }
   0xc   :  { %83 = vsyncadd [#allocation4], 4294967232  ;;  %vm34_vm0 = vcmask 1043456   ;;  %v27_v0 = vld [vmem:[#allocation3] sm:$0xf]  ;;  %vm47_vm1 = vcmask 7168   ;;  %v50_v8 = vstv %s122_s2 }
   0xd   :  { %v59_v1 = vld [vmem:[%s121_s1] ss:$0 sm:$0xff]  ;;  %v60_v2 = vld [vmem:[%s121_s1 + $0x1] ss:$0 sm:$0xff]  ;;  %vm52_vm2 = vcmask 11264  }
   0xe   :  { %v33_v3 = vmul.f32 %v59_v1, %v27_v0  ;;  %v43_v4 = vmul.f32 %v60_v2, %v27_v0 }
  0x10   :  { %v35_v5 = vsel %vm34_vm0, %v33_v3, 0.0  ;;  %v44_v6 = vsel %vm34_vm0, %v43_v4, 0.0 }
  0x11   :  { %36 = vadd.xlane.f32.xlu0 %v35_v5 }
  0x15   :  { %45 = vadd.xlane.f32.xlu0 %v44_v6 }
  0x9a   :  { %v37_v7 = vpop.xlane.xlu0 %36 }
  0x9e   :  { %v46_v9 = vpop.xlane.xlu0 %45 }
  0x9f   :  { %v48_v10 = vsel %vm47_vm1, %v37_v7, %v46_v9 }
  0xa0   :  { %v51_v11 = vadd.f32 %v50_v8, %v48_v10 }
  0xa2   :  { %53 = vst.msk [vmem:[%s123_s3] sm:$0xf] %vm52_vm2, %v51_v11 }
  0xa3   :  { %58 = vsyncpa [#allocation4], 1 }

</bundles_post_ra>
